<compile_context>
chip_gen: v6e
topology: v6e:2x2x1
jax: 0.10.0
libtpu: 0.0.40
codegen_flags: <defaults>
</compile_context>

<pallas_src>
import jax
import jax.numpy as jnp
from jax import lax
from jax.experimental import pallas as pl
from jax.experimental.pallas import tpu as pltpu


def _hdelta_jacobian_kernel(zs_ref, w1t_ref, b1_ref, coeff_ref, o_ref):
    # zs_ref:    (TB, Z)  native-layout batch tile (streamed / double-buffered)
    # w1t_ref:   (H, Z)   W1^T, VMEM-resident across grid steps
    # b1_ref:    (H, 1)   resident
    # coeff_ref: (H, 1)   precomputed W2[:, 0] * W1[0, :], resident
    # o_ref:     (1, TB)  lane-dense output row
    #
    # Contract over Z: (H, Z) x (TB, Z) -> (H, TB); batch lands on lanes.
    h_preT = lax.dot_general(
        w1t_ref[...], zs_ref[...],
        dimension_numbers=(((1,), (1,)), ((), ())),
        preferred_element_type=jnp.float32) + b1_ref[...]        # (H, TB)
    t = jnp.tanh(h_preT)                                          # EUP
    dtanhT = 1.0 - t * t                                          # VPU
    # (1,H)@(H,TB) MXU dot replaced by VPU mul + sublane (XLU) reduce.
    o_ref[...] = jnp.sum(coeff_ref[...] * dtanhT, axis=0, keepdims=True)


def _default_tile_b(B):
    """Adaptive batch tile.

    Big enough to amortize the ~0.35 us per-grid-step overhead, small enough
    that the lane-padded (tb, Z) f32 zs buffers (tb*128*4 bytes each, double
    buffered) plus the (H, tb) f32 intermediates fit the smallest scoped-VMEM
    default (16 MiB on v5e).  >=4 grid steps when B is large so
    dimension_semantics=('parallel',) can shard the batch over v7x's 2 TCs.
    """
    if B <= 1024:
        return B                                # single full-extent block
    tb = -(-B // 4)                             # cdiv: >= 4 grid steps
    tb = ((tb + 127) // 128) * 128              # lane-dense output blocks
    return max(512, min(tb, 8192))              # 8192 -> ~11 MiB/step worst case


def hdelta_jacobian_forward(zs, zdots, W1, b1, W2, *, tile_b=None):
    """Pallas implementation of HDeltaJacobian.forward.

    zs: (B, Z), zdots unused (matches torch), W1: (Z, H), b1: (H,), W2: (H, Z).
    Returns (B, 1) float32.
    """
    del zdots  # forward only differentiates through zs (matches torch spec)
    B, Z = zs.shape
    H = W1.shape[1]

    zs = zs.astype(jnp.float32)
    W1 = W1.astype(jnp.float32)
    w1t = W1.T                                            # (H, Z), tiny
    b1col = b1.reshape(H, 1).astype(jnp.float32)          # (H, 1)
    # Hoisted out of the kernel: coeff[h] = W2[h, 0] * W1[0, h]  (column form)
    coeff = (W2[:, 0].astype(jnp.float32) * W1[0, :]).reshape(H, 1)

    if tile_b is None:
        tile_b = _default_tile_b(B)
    if tile_b >= B:
        tb = B                                            # single full-extent block
    else:
        tb = ((tile_b + 127) // 128) * 128                # lane-dense out blocks
        if tb >= B:
            tb = B
    grid = (pl.cdiv(B, tb),)                              # partial last block is clipped

    cost = pl.CostEstimate(
        flops=2 * B * H * Z + 4 * B * H,                  # dot + bias/dtanh/coeff/reduce
        transcendentals=B * H,
        bytes_accessed=(B * Z + B) * 4 + (H * Z + 2 * H) * 4,
    )

    out_row = pl.pallas_call(
        _hdelta_jacobian_kernel,
        out_shape=jax.ShapeDtypeStruct((1, B), jnp.float32),
        grid=grid,
        in_specs=[
            pl.BlockSpec((tb, Z), lambda i: (i, 0)),      # zs streamed, native layout
            pl.BlockSpec((H, Z), lambda i: (0, 0)),       # W1^T resident
            pl.BlockSpec((H, 1), lambda i: (0, 0)),       # bias resident
            pl.BlockSpec((H, 1), lambda i: (0, 0)),       # coeff resident
        ],
        out_specs=pl.BlockSpec((1, tb), lambda i: (0, i)),
        compiler_params=pltpu.CompilerParams(
            dimension_semantics=("parallel",)),           # v7x: shard batch over 2 TCs
        cost_estimate=cost,
    )(zs, w1t, b1col, coeff)

    return out_row[0, :B].reshape(B, 1)


if __name__ == "__main__":
    # Small deterministic shapes.
    B, Z, H = 8, 16, 32

    key = jax.random.PRNGKey(0)
    k_zs, k_zd, k_w1, k_b1, k_w2, k_b2 = jax.random.split(key, 6)

    zs = jax.random.normal(k_zs, (B, Z), dtype=jnp.float32)
    zdots = jax.random.normal(k_zd, (B, Z), dtype=jnp.float32)

    # Deterministic synthetic reset_map parameters (zdyn.reset_map).
    W1 = jax.random.normal(k_w1, (Z, H), dtype=jnp.float32) / jnp.sqrt(Z)
    b1 = jax.random.normal(k_b1, (H,), dtype=jnp.float32) * 0.1
    W2 = jax.random.normal(k_w2, (H, Z), dtype=jnp.float32) / jnp.sqrt(H)
    b2 = jax.random.normal(k_b2, (Z,), dtype=jnp.float32) * 0.1

    # Pure-JAX reference: autodiff through the reset map, mirroring
    # torch.autograd.grad(reset_map(zs)[:, 0].sum(), zs)[0][:, 0, None].
    def reset_map(z):  # (B, Z) -> (B, Z)
        return jnp.tanh(z @ W1 + b1) @ W2 + b2

    # 1) Small case (single full-extent block).
    out = jax.block_until_ready(hdelta_jacobian_forward(zs, zdots, W1, b1, W2))
    assert out.shape == (B, 1), out.shape
    ref = jax.grad(lambda z: reset_map(z)[:, 0].sum())(zs)[:, 0:1]
    assert jnp.allclose(out, ref, atol=1e-5, rtol=1e-5), (out, ref)

    # 2) Exercise the gridded path with a partial (clipped) last block.
    B2 = 300
    zs2 = jax.random.normal(jax.random.PRNGKey(1), (B2, Z), dtype=jnp.float32)
    zdots2 = jnp.zeros_like(zs2)
    out2 = jax.block_until_ready(
        hdelta_jacobian_forward(zs2, zdots2, W1, b1, W2, tile_b=128))
    assert out2.shape == (B2, 1), out2.shape
    ref2 = jax.grad(lambda z: reset_map(z)[:, 0].sum())(zs2)[:, 0:1]
    assert jnp.allclose(out2, ref2, atol=1e-5, rtol=1e-5), (out2, ref2)

    # 3) Adaptive tile path (multi-step grid, default tile_b).
    B3 = 4096
    zs3 = jax.random.normal(jax.random.PRNGKey(2), (B3, Z), dtype=jnp.float32)
    out3 = jax.block_until_ready(
        hdelta_jacobian_forward(zs3, jnp.zeros_like(zs3), W1, b1, W2))
    ref3 = jax.grad(lambda z: reset_map(z)[:, 0].sum())(zs3)[:, 0:1]
    assert jnp.allclose(out3, ref3, atol=1e-5, rtol=1e-5)

    print("KERNEL_OK")
</pallas_src>

<mosaic_0001>
module attributes {stable_mosaic.version = 11 : i64} {
  func.func @_hdelta_jacobian_kernel(%arg0: i32, %arg1: memref<8x16xf32, #tpu.memory_space<vmem>>, %arg2: memref<32x16xf32, #tpu.memory_space<vmem>>, %arg3: memref<32x1xf32, #tpu.memory_space<vmem>>, %arg4: memref<32x1xf32, #tpu.memory_space<vmem>>, %arg5: memref<1x8xf32, #tpu.memory_space<vmem>>) attributes {dimension_semantics = [#tpu.dimension_semantics<parallel>], iteration_bounds = array<i64: 1>, scalar_prefetch = 0 : i64, scratch_operands = 0 : i64, tpu.core_type = #tpu.core_type<tc>, window_params = [{transform_indices = @transform_0, window_bounds = array<i64: 8, 16>}, {pipeline_mode = #tpu.pipeline_mode<synchronous>, transform_indices = @transform_1, window_bounds = array<i64: 32, 16>}, {pipeline_mode = #tpu.pipeline_mode<synchronous>, transform_indices = @transform_2, window_bounds = array<i64: 32, 1>}, {pipeline_mode = #tpu.pipeline_mode<synchronous>, transform_indices = @transform_3, window_bounds = array<i64: 32, 1>}, {transform_indices = @transform_4, window_bounds = array<i64: 1, 8>}]} {
    %c0 = arith.constant 0 : index
    %c0_0 = arith.constant 0 : index
    %0 = vector.load %arg2[%c0, %c0_0] : memref<32x16xf32, #tpu.memory_space<vmem>>, vector<32x16xf32>
    %c0_1 = arith.constant 0 : index
    %c0_2 = arith.constant 0 : index
    %1 = vector.load %arg1[%c0_1, %c0_2] : memref<8x16xf32, #tpu.memory_space<vmem>>, vector<8x16xf32>
    %cst = arith.constant dense<0.000000e+00> : vector<32x8xf32>
    %2 = tpu.matmul %0, %1, %cst {dimension_numbers = #tpu.dot_dimension_numbers<[1], [1], [0], [0], [0, 0, 1, 0], [], []>} : vector<32x16xf32>, vector<8x16xf32>, vector<32x8xf32> -> vector<32x8xf32>
    %c0_3 = arith.constant 0 : index
    %c0_4 = arith.constant 0 : index
    %3 = vector.load %arg3[%c0_3, %c0_4] : memref<32x1xf32, #tpu.memory_space<vmem>>, vector<32x1xf32>
    %4 = vector.broadcast %3 : vector<32x1xf32> to vector<32x8xf32>
    %5 = arith.addf %2, %4 : vector<32x8xf32>
    %6 = math.tanh %5 : vector<32x8xf32>
    %7 = arith.mulf %6, %6 : vector<32x8xf32>
    %cst_5 = arith.constant 1.000000e+00 : f32
    %8 = vector.broadcast %cst_5 : f32 to vector<32x8xf32>
    %9 = arith.subf %8, %7 : vector<32x8xf32>
    %c0_6 = arith.constant 0 : index
    %c0_7 = arith.constant 0 : index
    %10 = vector.load %arg4[%c0_6, %c0_7] : memref<32x1xf32, #tpu.memory_space<vmem>>, vector<32x1xf32>
    %11 = vector.broadcast %10 : vector<32x1xf32> to vector<32x8xf32>
    %12 = arith.mulf %11, %9 : vector<32x8xf32>
    %cst_8 = arith.constant dense<0.000000e+00> : vector<8xf32>
    %13 = vector.multi_reduction <add>, %12, %cst_8 [0] : vector<32x8xf32> to vector<8xf32>
    %14 = vector.shape_cast %13 : vector<8xf32> to vector<1x8xf32>
    %c0_9 = arith.constant 0 : index
    %c0_10 = arith.constant 0 : index
    %15 = vector.load %arg5[%c0_9, %c0_10] : memref<1x8xf32, #tpu.memory_space<vmem>>, vector<1x8xf32>
    tpu.vector_store %arg5[%c0_9, %c0_10], %14 {strides = array<i32>} : memref<1x8xf32, #tpu.memory_space<vmem>>, vector<1x8xf32>,
    return
  }
  func.func @transform_0(%arg0: i32) -> (i32, i32) {
    %c0_i32 = arith.constant 0 : i32
    %c0_i32_0 = arith.constant 0 : i32
    return %arg0, %c0_i32 : i32, i32
  }
  func.func @transform_1(%arg0: i32) -> (i32, i32) {
    %c0_i32 = arith.constant 0 : i32
    %c0_i32_0 = arith.constant 0 : i32
    %c0_i32_1 = arith.constant 0 : i32
    return %c0_i32, %c0_i32_0 : i32, i32
  }
  func.func @transform_2(%arg0: i32) -> (i32, i32) {
    %c0_i32 = arith.constant 0 : i32
    %c0_i32_0 = arith.constant 0 : i32
    %c0_i32_1 = arith.constant 0 : i32
    return %c0_i32, %c0_i32_0 : i32, i32
  }
  func.func @transform_3(%arg0: i32) -> (i32, i32) {
    %c0_i32 = arith.constant 0 : i32
    %c0_i32_0 = arith.constant 0 : i32
    %c0_i32_1 = arith.constant 0 : i32
    return %c0_i32, %c0_i32_0 : i32, i32
  }
  func.func @transform_4(%arg0: i32) -> (i32, i32) {
    %c0_i32 = arith.constant 0 : i32
    %c0_i32_0 = arith.constant 0 : i32
    return %c0_i32, %arg0 : i32, i32
  }
}

</mosaic_0001>

<bundles_post_ra>
// kernel: tpu_custom_call.1
= control target key start
LH: loop header
LB: loop body
LE: loop exit
PB: predicated region body
PF: predicated region fallthrough
CT: control target
= control target key end

     0   :  { %vm47_vm0 = vcmask 130048   ;;  %v272_v7 = vmov 0   ;;  %s349_s0 = inlined_call_operand.vmem [shape: f32[8,16], index: 0, kind: input, shape index: {}]   ;;  %s350_s1 = inlined_call_operand.vmem [shape: f32[32,16], index: 1, kind: input, shape index: {}]   ;;  %s351_s2 = inlined_call_operand.vmem [shape: f32[32,1], index: 2, kind: input, shape index: {}]   ;;  %s352_s3 = inlined_call_operand.vmem [shape: f32[32,1], index: 3, kind: input, shape index: {}]   ;;  %s353_s4 = inlined_call_operand.hbm [shape: f32[1,8], index: 4, kind: output, shape index: {}]  }
   0x1   :  { %v22_v0 = vld [vmem:[%s349_s0] sm:$0xff]  ;;  %v20_v2 = vld [vmem:[%s350_s1 + $0x10] sm:$0xff]  ;;  %v19_v3 = vld [vmem:[%s350_s1 + $0x8] sm:$0xff]  ;;  %240 = vset.pattern.permute.xlu0 %v272_v7  ;;  %241 = vset.pattern.permute.xlu1 %v272_v7 }
   0x2   :  { %v18_v1 = vld [vmem:[%s350_s1] sm:$0xff]  ;;  %228 = vmatprep.subr.msk.mxu0 %vm47_vm0, %v22_v0  ;;  %236 = vmatprep.subr.msk.mxu1 %vm47_vm0, %v22_v0  ;;  %v21_v4 = vld [vmem:[%s350_s1 + $0x18] sm:$0xff]  ;;  %v25_v6 = vld [vmem:[%s351_s2 + $0x10] sm:$0xff] }
   0x3   :  { %229 = vmatpush3.xpose.msk.msra.mxu0 %vm47_vm0, %v22_v0  ;;  %237 = vmatpush3.xpose.msk.msra.mxu1 %vm47_vm0, %v22_v0  ;;  %v23_v5 = vld [vmem:[%s351_s2] sm:$0xff] }
   0x4   :  { %230 = vmatprep.mubr.msk.f32.mxu0 %vm47_vm0, %v18_v1  ;;  %233 = vmatprep.mubr.msk.f32.mxu1 %vm47_vm0, %v20_v2 }
   0x5   :  { %9 = vsyncpa [#allocation3], 0  ;;  %29 = vperm.xlu0 %240, %v23_v5   ;;  %39 = vperm.xlu1 %241, %v25_v6   ;;  %v24_v8 = vld [vmem:[%s351_s2 + $0x8] sm:$0xff]  ;;  %v26_v9 = vld [vmem:[%s351_s2 + $0x18] sm:$0xff]  ;;  %vm188_vm1 = vcmask 64512   ;;  %s273_s2 = smov [#allocation2]  }
   0x6   :  { %231 = vmatmul.mubr.msk.f32.vlgmr.msra.gmra.mxu0 %vm47_vm0, %v19_v3  ;;  %234 = vmatmul.mubr.msk.f32.vlgmr.msra.gmra.mxu1 %vm47_vm0, %v21_v4  ;;  %v160_v10 = vld [vmem:[%s352_s3] sm:$0xff]  ;;  %v161_v11 = vld [vmem:[%s352_s3 + $0x8] sm:$0xff]  ;;  %v162_v12 = vld [vmem:[%s352_s3 + $0x10] sm:$0xff]  ;;  %vm202_vm2 = vcmask 57344  }
   0x7   :  { %v163_v13 = vld [vmem:[%s352_s3 + $0x18] sm:$0xff]  ;;  %s210_s3 = sshll.u32 %s273_s2, 4  ;;  %s211_s3 = int_to_ptr.vmem [resolvable:$true] %s210_s3 }
   0x8   :  { %s250_s13 = scalar_lea.vmem %s211_s3, 16  ;;  %s254_s14 = scalar_lea.vmem %s211_s3, 32 }
   0x9   :  { %34 = vperm.xlu0 %240, %v24_v8   ;;  %44 = vperm.xlu1 %241, %v26_v9   ;;  %p251_p0 = scmp.ne.s32.totalorder %s211_s3, %s250_s13  ;;  %p255_p1 = scmp.lt.s32.totalorder %s211_s3, %s211_s3 }
   0xa   :  { %p256_p2 = scmp.lt.s32.totalorder %s254_s14, %s250_s13 }
   0xc   :  { %p257_p3 = por %p256_p2, %p255_p1 }
   0xd   :  { %166 = vperm.xlu0 %240, %v160_v10   ;;  %171 = vperm.xlu1 %241, %v161_v11  }
   0xe   :  { %p258_p4 = pnand %p257_p3, %p251_p0 }
  0x11   :  { %176 = vperm.xlu0 %240, %v162_v12   ;;  %181 = vperm.xlu1 %241, %v163_v13  }
  0x80   :  { %v30_v14 = vpop.permute.xlu0 %29  ;;  %v40_v15 = vpop.permute.xlu1 %39 }
  0x84   :  { %v35_v16 = vpop.permute.xlu0 %34  ;;  %v45_v17 = vpop.permute.xlu1 %44 }
  0x88   :  { %v167_v28 = vpop.permute.xlu0 %166  ;;  %v172_v31 = vpop.permute.xlu1 %171 }
  0x8c   :  { %v177_v41 = vpop.permute.xlu0 %176  ;;  %v182_v43 = vpop.permute.xlu1 %181 }
  0xc6   :  { %v232_v18 = vpop.f32.mrf.mxu0  ;;  %v235_v19 = vpop.f32.mrf.mxu1 }
  0xc7   :  { %v135_v20 = vadd.f32 %v232_v18, %v35_v16  ;;  %v145_v21 = vadd.f32 %v235_v19, %v45_v17 }
  0xc8   :  { %v129_v22 = vpop.f32.mrf.mxu0  ;;  %v139_v23 = vpop.f32.mrf.mxu1 }
  0xc9   :  { %242 = vtanh.f32 %v135_v20  ;;  %v130_v24 = vadd.f32 %v129_v22, %v30_v14  ;;  %v140_v25 = vadd.f32 %v139_v23, %v40_v15 }
  0xca   :  { %244 = vtanh.f32 %v145_v21 }
  0xcb   :  { %246 = vtanh.f32 %v130_v24 }
  0xcc   :  { %248 = vtanh.f32 %v140_v25 }
  0xd6   :  { %v243_v26 = vpop.eup %242 }
  0xd7   :  { %v245_v27 = vpop.eup %244  ;;  %v153_v29 = vmul.f32 %v243_v26, %v243_v26 }
  0xd8   :  { %v247_v30 = vpop.eup %246  ;;  %v155_v32 = vmul.f32 %v245_v27, %v245_v27 }
  0xd9   :  { %v249_v33 = vpop.eup %248  ;;  %v157_v34 = vsub.f32 1.0, %v153_v29  ;;  %v152_v35 = vmul.f32 %v247_v30, %v247_v30 }
  0xda   :  { %v154_v36 = vmul.f32 %v249_v33, %v249_v33  ;;  %v159_v38 = vsub.f32 1.0, %v155_v32 }
  0xdb   :  { %v185_v37 = vmul.f32 %v172_v31, %v157_v34  ;;  %v156_v39 = vsub.f32 1.0, %v152_v35 }
  0xdc   :  { %v158_v40 = vsub.f32 1.0, %v154_v36  ;;  %v187_v45 = vmul.f32 %v182_v43, %v159_v38 }
  0xdd   :  { %v184_v42 = vmul.f32 %v167_v28, %v156_v39  ;;  %v190_v46 = vsel %vm188_vm1, %v185_v37, 0.0 }
  0xde   :  { %v186_v44 = vmul.f32 %v177_v41, %v158_v40  ;;  %v194_v51 = vsel %vm188_vm1, %v187_v45, 0.0 }
  0xdf   :  { %v189_v47 = vsel %vm188_vm1, %v184_v42, 0.0 }
  0xe0   :  { %v191_v48 = vadd.f32 %v190_v46, %v189_v47  ;;  %v192_v49 = vsel %vm188_vm1, %v186_v44, 0.0 }
  0xe2   :  { %v193_v50 = vadd.f32 %v192_v49, %v191_v48 }
  0xe4   :  { %v195_v52 = vadd.f32 %v194_v51, %v193_v50 }
  0xe6   :  { %v196_v53 = vrot.slane %v195_v52, 4 }
  0xe8   :  { %v197_v54 = vadd.f32 %v196_v53, %v195_v52 }
  0xea   :  { %v198_v55 = vrot.slane %v197_v54, 2 }
  0xec   :  { %v199_v56 = vadd.f32 %v198_v55, %v197_v54 }
  0xee   :  { %v200_v57 = vrot.slane %v199_v56, 1 }
  0xf0   :  { %v201_v58 = vadd.f32 %v200_v57, %v199_v56 }
  0xf2   :  { %203 = vst.msk [vmem:[#allocation2] sm:$0x1] %vm202_vm2, %v201_v58 }
  0xf3   :  { %261 = shalt.err (!%p258_p4)
}
  0xf4   :  { %213 = dma.vmem_to_hbm [thread:$0]  %s211_s3, 16, %s353_s4, [#allocation3]  }
  0xf5   :  { %270 = dma.done.wait [#allocation3], 16  }
  0xf6   :  { %271 = vsyncadd [#allocation3], 4294967280 }
  0xf7   :  { %217 = vsyncpa [#allocation3], 1 }

</bundles_post_ra>
